<compile_context>
chip_gen: v7x
topology: tpu7x:2x2x1
jax: 0.10.0
libtpu: 0.0.40
codegen_flags: <defaults>
</compile_context>

<pallas_src>
import functools
import math

import jax
import jax.numpy as jnp
from jax.experimental import pallas as pl
from jax.experimental.pallas import tpu as pltpu


def _bilinear_kernel(xl_t_ref, xr_blk_ref, xr_full_ref, u_ref, wl_ref, wr_ref,
                     bias_ref, out_ref, acc_ref, *, block_r):
    """One (batch-tile i, out-tile j, r-tile k) grid step."""
    k = pl.program_id(2)
    xl_t = xl_t_ref[...]                                    # (L, tB)

    @pl.when(k == 0)
    def _init():
        # Linear terms + bias seed the accumulator (kept as (tO, tB)).
        lin = jnp.dot(wl_ref[...], xl_t, preferred_element_type=jnp.float32)
        lin = lin + jnp.dot(wr_ref[...], xr_full_ref[...],
                            preferred_element_type=jnp.float32)
        acc_ref[...] = lin + bias_ref[...].astype(jnp.float32)

    # Bilinear contribution of this r-tile.
    xr_blk = xr_blk_ref[...].astype(jnp.float32)            # (tR, tB)
    acc = acc_ref[...]
    for r in range(block_r):                                # static unroll
        u_r = u_ref[r]                                      # (tO, L)
        m = jnp.dot(u_r, xl_t, preferred_element_type=jnp.float32)   # (tO, tB)
        acc = acc + xr_blk[r:r + 1, :] * m                  # row-broadcast scale
    acc_ref[...] = acc

    @pl.when(k == pl.num_programs(2) - 1)
    def _finalize():
        out_ref[...] = jnp.transpose(acc_ref[...]).astype(out_ref.dtype)


def _pick_tile(dim, target):
    """Tile for one grid axis: full extent for small/ragged dims, else `target`.

    Full-extent blocks are always legal regardless of the (8, 128) tiling
    constraint; sub-tiles are only used when they divide the dim evenly.
    """
    # TODO(synk): pad ragged batch/out/right dims (and grid-tile n_left for
    # very large left-feature sizes) instead of falling back to full-extent
    # blocks.
    if dim <= target or dim % target != 0:
        return dim
    return target


def bilinear_forward(input_left, input_right, U, W_l, W_r, bias=None, *,
                     block_b=128, block_o=128, block_r=8):
    """Pallas forward of fastNLP BiLinear for inputs of shape (..., features)."""
    n_out, n_left, n_right = U.shape
    lead = input_left.shape[:-1]
    assert input_right.shape[:-1] == lead, "left/right batch dims mismatch"
    assert input_left.shape[-1] == n_left and input_right.shape[-1] == n_right
    # Faithful to the reference module: W_r is (n_out, n_left) applied to x_r.
    assert n_left == n_right, "BiLinear (as written) requires n_left == n_right"

    batch = math.prod(lead) if lead else 1
    xl = input_left.reshape(batch, n_left)
    xr = input_right.reshape(batch, n_right)

    tb = _pick_tile(batch, block_b)
    to = _pick_tile(n_out, block_o)
    tr = _pick_tile(n_right, block_r)

    # Layout plumbing on the XLA side (batch on lanes; bilinear weight with the
    # reduced right-feature axis leading so the kernel indexes it statically).
    xl_t = xl.T                                   # (L, B)
    xr_t = xr.T                                   # (R, B)
    u_t = jnp.transpose(U, (2, 0, 1))             # (R, O, L)
    if bias is None:
        bias = jnp.zeros((n_out,), U.dtype)
    bias2d = bias.reshape(n_out, 1)               # (O, 1)

    grid = (batch // tb, n_out // to, n_right // tr)

    out = pl.pallas_call(
        functools.partial(_bilinear_kernel, block_r=tr),
        out_shape=jax.ShapeDtypeStruct((batch, n_out), input_left.dtype),
        grid_spec=pltpu.PrefetchScalarGridSpec(
            num_scalar_prefetch=0,
            grid=grid,
            in_specs=[
                pl.BlockSpec((n_left, tb), lambda i, j, k: (0, i)),        # x_l^T
                pl.BlockSpec((tr, tb), lambda i, j, k: (k, i)),            # x_r^T, r-tile
                pl.BlockSpec((n_right, tb), lambda i, j, k: (0, i)),       # x_r^T, full
                pl.BlockSpec((tr, to, n_left), lambda i, j, k: (k, j, 0)), # U^T
                pl.BlockSpec((to, n_left), lambda i, j, k: (j, 0)),        # W_l
                pl.BlockSpec((to, n_left), lambda i, j, k: (j, 0)),        # W_r
                pl.BlockSpec((to, 1), lambda i, j, k: (j, 0)),             # bias
            ],
            out_specs=pl.BlockSpec((tb, to), lambda i, j, k: (i, j)),
            scratch_shapes=[pltpu.VMEM((to, tb), jnp.float32)],
        ),
        compiler_params=pltpu.CompilerParams(
            dimension_semantics=("parallel", "parallel", "arbitrary"),
        ),
    )(xl_t, xr_t, xr_t, u_t, W_l, W_r, bias2d)

    return out.reshape(lead + (n_out,))


class BiLinear:
    """JAX/Pallas mirror of the PyTorch BiLinear nn.Module (forward only)."""

    def __init__(self, n_left, n_right, n_out, bias=True, *, key):
        self.n_left, self.n_right, self.n_out = n_left, n_right, n_out
        k_u, k_l, k_r = jax.random.split(key, 3)

        def xavier_uniform(k, shape, fan_in, fan_out):
            bound = math.sqrt(6.0 / (fan_in + fan_out))
            return jax.random.uniform(k, shape, jnp.float32, -bound, bound)

        # Same fan conventions as nn.init.xavier_uniform_.
        self.U = xavier_uniform(k_u, (n_out, n_left, n_right),
                                n_left * n_right, n_out * n_right)
        self.W_l = xavier_uniform(k_l, (n_out, n_left), n_left, n_out)
        self.W_r = xavier_uniform(k_r, (n_out, n_left), n_left, n_out)
        self.bias = jnp.zeros((n_out,), jnp.float32) if bias else None

    def __call__(self, input_left, input_right):
        return bilinear_forward(input_left, input_right,
                                self.U, self.W_l, self.W_r, self.bias)


if __name__ == "__main__":
    key = jax.random.PRNGKey(0)
    k_mod, k_xl, k_xr, k_bias = jax.random.split(key, 4)

    batch1, batch2 = 2, 4              # flattened batch = 8
    n_left = n_right = 32
    n_out = 32

    module = BiLinear(n_left, n_right, n_out, bias=True, key=k_mod)
    # reset_parameters() zeroes the bias; use a non-zero one here so the bias
    # path of the kernel is actually exercised by the check below.
    module.bias = 0.1 * jax.random.normal(k_bias, (n_out,), jnp.float32)

    input_left = jax.random.normal(k_xl, (batch1, batch2, n_left), jnp.float32)
    input_right = jax.random.normal(k_xr, (batch1, batch2, n_right), jnp.float32)

    out = module(input_left, input_right)
    out = jax.block_until_ready(out)

    # Pure-JAX reference of the PyTorch forward.
    xl2 = input_left.reshape(-1, n_left)
    xr2 = input_right.reshape(-1, n_right)
    ref = jnp.einsum("bl,olr,br->bo", xl2, module.U, xr2)
    ref = ref + xl2 @ module.W_l.T + xr2 @ module.W_r.T + module.bias
    ref = ref.reshape(batch1, batch2, n_out)

    assert out.shape == (batch1, batch2, n_out), out.shape
    assert out.dtype == input_left.dtype
    max_err = float(jnp.max(jnp.abs(out - ref)))
    assert jnp.allclose(out, ref, atol=2e-2, rtol=2e-2), max_err

    print("KERNEL_OK")
</pallas_src>

<mosaic_0001>
module attributes {stable_mosaic.version = 11 : i64} {
  func.func @_bilinear_kernel(%arg0: i32, %arg1: i32, %arg2: i32, %arg3: memref<32x8xf32, #tpu.memory_space<vmem>>, %arg4: memref<8x8xf32, #tpu.memory_space<vmem>>, %arg5: memref<32x8xf32, #tpu.memory_space<vmem>>, %arg6: memref<8x32x32xf32, #tpu.memory_space<vmem>>, %arg7: memref<32x32xf32, #tpu.memory_space<vmem>>, %arg8: memref<32x32xf32, #tpu.memory_space<vmem>>, %arg9: memref<32x1xf32, #tpu.memory_space<vmem>>, %arg10: memref<8x32xf32, #tpu.memory_space<vmem>>, %arg11: memref<32x8xf32, #tpu.memory_space<vmem>>) attributes {dimension_semantics = [#tpu.dimension_semantics<parallel>, #tpu.dimension_semantics<parallel>, #tpu.dimension_semantics<arbitrary>], iteration_bounds = array<i64: 1, 1, 4>, scalar_prefetch = 0 : i64, scratch_operands = 1 : i64, tpu.core_type = #tpu.core_type<tc>, window_params = [{transform_indices = @transform_0, window_bounds = array<i64: 32, 8>}, {transform_indices = @transform_1, window_bounds = array<i64: 8, 8>}, {transform_indices = @transform_2, window_bounds = array<i64: 32, 8>}, {transform_indices = @transform_3, window_bounds = array<i64: 8, 32, 32>}, {transform_indices = @transform_4, window_bounds = array<i64: 32, 32>}, {transform_indices = @transform_5, window_bounds = array<i64: 32, 32>}, {transform_indices = @transform_6, window_bounds = array<i64: 32, 1>}, {transform_indices = @transform_7, window_bounds = array<i64: 8, 32>}]} {
    %c0 = arith.constant 0 : index
    %c0_0 = arith.constant 0 : index
    %0 = vector.load %arg3[%c0, %c0_0] : memref<32x8xf32, #tpu.memory_space<vmem>>, vector<32x8xf32>
    %c0_i32 = arith.constant 0 : i32
    %1 = arith.cmpi eq, %arg2, %c0_i32 : i32
    %2 = arith.extui %1 : i1 to i32
    %c0_i32_1 = arith.constant 0 : i32
    %3 = arith.cmpi ne, %2, %c0_i32_1 : i32
    scf.if %3 {
      %c0_33 = arith.constant 0 : index
      %c0_34 = arith.constant 0 : index
      %66 = vector.load %arg7[%c0_33, %c0_34] : memref<32x32xf32, #tpu.memory_space<vmem>>, vector<32x32xf32>
      %cst_35 = arith.constant dense<0.000000e+00> : vector<32x8xf32>
      %67 = tpu.matmul %66, %0, %cst_35 {dimension_numbers = #tpu.dot_dimension_numbers<[1], [0], [0], [1], [0, 0, 1, 1], [], []>} : vector<32x32xf32>, vector<32x8xf32>, vector<32x8xf32> -> vector<32x8xf32>
      %c0_36 = arith.constant 0 : index
      %c0_37 = arith.constant 0 : index
      %68 = vector.load %arg8[%c0_36, %c0_37] : memref<32x32xf32, #tpu.memory_space<vmem>>, vector<32x32xf32>
      %c0_38 = arith.constant 0 : index
      %c0_39 = arith.constant 0 : index
      %69 = vector.load %arg5[%c0_38, %c0_39] : memref<32x8xf32, #tpu.memory_space<vmem>>, vector<32x8xf32>
      %cst_40 = arith.constant dense<0.000000e+00> : vector<32x8xf32>
      %70 = tpu.matmul %68, %69, %cst_40 {dimension_numbers = #tpu.dot_dimension_numbers<[1], [0], [0], [1], [0, 0, 1, 1], [], []>} : vector<32x32xf32>, vector<32x8xf32>, vector<32x8xf32> -> vector<32x8xf32>
      %71 = arith.addf %67, %70 : vector<32x8xf32>
      %c0_41 = arith.constant 0 : index
      %c0_42 = arith.constant 0 : index
      %72 = vector.load %arg9[%c0_41, %c0_42] : memref<32x1xf32, #tpu.memory_space<vmem>>, vector<32x1xf32>
      %73 = vector.broadcast %72 : vector<32x1xf32> to vector<32x8xf32>
      %74 = arith.addf %71, %73 : vector<32x8xf32>
      %c0_43 = arith.constant 0 : index
      %c0_44 = arith.constant 0 : index
      %75 = vector.load %arg11[%c0_43, %c0_44] : memref<32x8xf32, #tpu.memory_space<vmem>>, vector<32x8xf32>
      tpu.vector_store %arg11[%c0_43, %c0_44], %74 {strides = array<i32>} : memref<32x8xf32, #tpu.memory_space<vmem>>, vector<32x8xf32>,
    } else {
    }
    %c0_2 = arith.constant 0 : index
    %c0_3 = arith.constant 0 : index
    %4 = vector.load %arg4[%c0_2, %c0_3] : memref<8x8xf32, #tpu.memory_space<vmem>>, vector<8x8xf32>
    %c0_4 = arith.constant 0 : index
    %c0_5 = arith.constant 0 : index
    %5 = vector.load %arg11[%c0_4, %c0_5] : memref<32x8xf32, #tpu.memory_space<vmem>>, vector<32x8xf32>
    %c0_6 = arith.constant 0 : index
    %c0_7 = arith.constant 0 : index
    %c0_8 = arith.constant 0 : index
    %6 = vector.load %arg6[%c0_6, %c0_7, %c0_8] : memref<8x32x32xf32, #tpu.memory_space<vmem>>, vector<1x32x32xf32>
    %7 = vector.shape_cast %6 : vector<1x32x32xf32> to vector<32x32xf32>
    %cst = arith.constant dense<0.000000e+00> : vector<32x8xf32>
    %8 = tpu.matmul %7, %0, %cst {dimension_numbers = #tpu.dot_dimension_numbers<[1], [0], [0], [1], [0, 0, 1, 1], [], []>} : vector<32x32xf32>, vector<32x8xf32>, vector<32x8xf32> -> vector<32x8xf32>
    %9 = vector.extract_strided_slice %4 {offsets = [0, 0], sizes = [1, 8], strides = [1, 1]} : vector<8x8xf32> to vector<1x8xf32>
    %10 = vector.broadcast %9 : vector<1x8xf32> to vector<32x8xf32>
    %11 = arith.mulf %10, %8 : vector<32x8xf32>
    %12 = arith.addf %5, %11 : vector<32x8xf32>
    %c1 = arith.constant 1 : index
    %c0_9 = arith.constant 0 : index
    %c0_10 = arith.constant 0 : index
    %13 = vector.load %arg6[%c1, %c0_9, %c0_10] : memref<8x32x32xf32, #tpu.memory_space<vmem>>, vector<1x32x32xf32>
    %14 = vector.shape_cast %13 : vector<1x32x32xf32> to vector<32x32xf32>
    %cst_11 = arith.constant dense<0.000000e+00> : vector<32x8xf32>
    %15 = tpu.matmul %14, %0, %cst_11 {dimension_numbers = #tpu.dot_dimension_numbers<[1], [0], [0], [1], [0, 0, 1, 1], [], []>} : vector<32x32xf32>, vector<32x8xf32>, vector<32x8xf32> -> vector<32x8xf32>
    %16 = vector.extract_strided_slice %4 {offsets = [1, 0], sizes = [1, 8], strides = [1, 1]} : vector<8x8xf32> to vector<1x8xf32>
    %17 = vector.broadcast %16 : vector<1x8xf32> to vector<32x8xf32>
    %18 = arith.mulf %17, %15 : vector<32x8xf32>
    %19 = arith.addf %12, %18 : vector<32x8xf32>
    %c2 = arith.constant 2 : index
    %c0_12 = arith.constant 0 : index
    %c0_13 = arith.constant 0 : index
    %20 = vector.load %arg6[%c2, %c0_12, %c0_13] : memref<8x32x32xf32, #tpu.memory_space<vmem>>, vector<1x32x32xf32>
    %21 = vector.shape_cast %20 : vector<1x32x32xf32> to vector<32x32xf32>
    %cst_14 = arith.constant dense<0.000000e+00> : vector<32x8xf32>
    %22 = tpu.matmul %21, %0, %cst_14 {dimension_numbers = #tpu.dot_dimension_numbers<[1], [0], [0], [1], [0, 0, 1, 1], [], []>} : vector<32x32xf32>, vector<32x8xf32>, vector<32x8xf32> -> vector<32x8xf32>
    %23 = vector.extract_strided_slice %4 {offsets = [2, 0], sizes = [1, 8], strides = [1, 1]} : vector<8x8xf32> to vector<1x8xf32>
    %24 = vector.broadcast %23 : vector<1x8xf32> to vector<32x8xf32>
    %25 = arith.mulf %24, %22 : vector<32x8xf32>
    %26 = arith.addf %19, %25 : vector<32x8xf32>
    %c3 = arith.constant 3 : index
    %c0_15 = arith.constant 0 : index
    %c0_16 = arith.constant 0 : index
    %27 = vector.load %arg6[%c3, %c0_15, %c0_16] : memref<8x32x32xf32, #tpu.memory_space<vmem>>, vector<1x32x32xf32>
    %28 = vector.shape_cast %27 : vector<1x32x32xf32> to vector<32x32xf32>
    %cst_17 = arith.constant dense<0.000000e+00> : vector<32x8xf32>
    %29 = tpu.matmul %28, %0, %cst_17 {dimension_numbers = #tpu.dot_dimension_numbers<[1], [0], [0], [1], [0, 0, 1, 1], [], []>} : vector<32x32xf32>, vector<32x8xf32>, vector<32x8xf32> -> vector<32x8xf32>
    %30 = vector.extract_strided_slice %4 {offsets = [3, 0], sizes = [1, 8], strides = [1, 1]} : vector<8x8xf32> to vector<1x8xf32>
    %31 = vector.broadcast %30 : vector<1x8xf32> to vector<32x8xf32>
    %32 = arith.mulf %31, %29 : vector<32x8xf32>
    %33 = arith.addf %26, %32 : vector<32x8xf32>
    %c4 = arith.constant 4 : index
    %c0_18 = arith.constant 0 : index
    %c0_19 = arith.constant 0 : index
    %34 = vector.load %arg6[%c4, %c0_18, %c0_19] : memref<8x32x32xf32, #tpu.memory_space<vmem>>, vector<1x32x32xf32>
    %35 = vector.shape_cast %34 : vector<1x32x32xf32> to vector<32x32xf32>
    %cst_20 = arith.constant dense<0.000000e+00> : vector<32x8xf32>
    %36 = tpu.matmul %35, %0, %cst_20 {dimension_numbers = #tpu.dot_dimension_numbers<[1], [0], [0], [1], [0, 0, 1, 1], [], []>} : vector<32x32xf32>, vector<32x8xf32>, vector<32x8xf32> -> vector<32x8xf32>
    %37 = vector.extract_strided_slice %4 {offsets = [4, 0], sizes = [1, 8], strides = [1, 1]} : vector<8x8xf32> to vector<1x8xf32>
    %38 = vector.broadcast %37 : vector<1x8xf32> to vector<32x8xf32>
    %39 = arith.mulf %38, %36 : vector<32x8xf32>
    %40 = arith.addf %33, %39 : vector<32x8xf32>
    %c5 = arith.constant 5 : index
    %c0_21 = arith.constant 0 : index
    %c0_22 = arith.constant 0 : index
    %41 = vector.load %arg6[%c5, %c0_21, %c0_22] : memref<8x32x32xf32, #tpu.memory_space<vmem>>, vector<1x32x32xf32>
    %42 = vector.shape_cast %41 : vector<1x32x32xf32> to vector<32x32xf32>
    %cst_23 = arith.constant dense<0.000000e+00> : vector<32x8xf32>
    %43 = tpu.matmul %42, %0, %cst_23 {dimension_numbers = #tpu.dot_dimension_numbers<[1], [0], [0], [1], [0, 0, 1, 1], [], []>} : vector<32x32xf32>, vector<32x8xf32>, vector<32x8xf32> -> vector<32x8xf32>
    %44 = vector.extract_strided_slice %4 {offsets = [5, 0], sizes = [1, 8], strides = [1, 1]} : vector<8x8xf32> to vector<1x8xf32>
    %45 = vector.broadcast %44 : vector<1x8xf32> to vector<32x8xf32>
    %46 = arith.mulf %45, %43 : vector<32x8xf32>
    %47 = arith.addf %40, %46 : vector<32x8xf32>
    %c6 = arith.constant 6 : index
    %c0_24 = arith.constant 0 : index
    %c0_25 = arith.constant 0 : index
    %48 = vector.load %arg6[%c6, %c0_24, %c0_25] : memref<8x32x32xf32, #tpu.memory_space<vmem>>, vector<1x32x32xf32>
    %49 = vector.shape_cast %48 : vector<1x32x32xf32> to vector<32x32xf32>
    %cst_26 = arith.constant dense<0.000000e+00> : vector<32x8xf32>
    %50 = tpu.matmul %49, %0, %cst_26 {dimension_numbers = #tpu.dot_dimension_numbers<[1], [0], [0], [1], [0, 0, 1, 1], [], []>} : vector<32x32xf32>, vector<32x8xf32>, vector<32x8xf32> -> vector<32x8xf32>
    %51 = vector.extract_strided_slice %4 {offsets = [6, 0], sizes = [1, 8], strides = [1, 1]} : vector<8x8xf32> to vector<1x8xf32>
    %52 = vector.broadcast %51 : vector<1x8xf32> to vector<32x8xf32>
    %53 = arith.mulf %52, %50 : vector<32x8xf32>
    %54 = arith.addf %47, %53 : vector<32x8xf32>
    %c7 = arith.constant 7 : index
    %c0_27 = arith.constant 0 : index
    %c0_28 = arith.constant 0 : index
    %55 = vector.load %arg6[%c7, %c0_27, %c0_28] : memref<8x32x32xf32, #tpu.memory_space<vmem>>, vector<1x32x32xf32>
    %56 = vector.shape_cast %55 : vector<1x32x32xf32> to vector<32x32xf32>
    %cst_29 = arith.constant dense<0.000000e+00> : vector<32x8xf32>
    %57 = tpu.matmul %56, %0, %cst_29 {dimension_numbers = #tpu.dot_dimension_numbers<[1], [0], [0], [1], [0, 0, 1, 1], [], []>} : vector<32x32xf32>, vector<32x8xf32>, vector<32x8xf32> -> vector<32x8xf32>
    %58 = vector.extract_strided_slice %4 {offsets = [7, 0], sizes = [1, 8], strides = [1, 1]} : vector<8x8xf32> to vector<1x8xf32>
    %59 = vector.broadcast %58 : vector<1x8xf32> to vector<32x8xf32>
    %60 = arith.mulf %59, %57 : vector<32x8xf32>
    %61 = arith.addf %54, %60 : vector<32x8xf32>
    %c0_30 = arith.constant 0 : index
    %c0_31 = arith.constant 0 : index
    %62 = vector.load %arg11[%c0_30, %c0_31] : memref<32x8xf32, #tpu.memory_space<vmem>>, vector<32x8xf32>
    tpu.vector_store %arg11[%c0_30, %c0_31], %61 {strides = array<i32>} : memref<32x8xf32, #tpu.memory_space<vmem>>, vector<32x8xf32>,
    %c3_i32 = arith.constant 3 : i32
    %63 = arith.cmpi eq, %arg2, %c3_i32 : i32
    %64 = arith.extui %63 : i1 to i32
    %c0_i32_32 = arith.constant 0 : i32
    %65 = arith.cmpi ne, %64, %c0_i32_32 : i32
    scf.if %65 {
      %c0_33 = arith.constant 0 : index
      %c0_34 = arith.constant 0 : index
      %66 = vector.load %arg11[%c0_33, %c0_34] : memref<32x8xf32, #tpu.memory_space<vmem>>, vector<32x8xf32>
      %67 = tpu.transpose %66, [1, 0] : vector<32x8xf32> -> vector<8x32xf32>
      %c0_35 = arith.constant 0 : index
      %c0_36 = arith.constant 0 : index
      %68 = vector.load %arg10[%c0_35, %c0_36] : memref<8x32xf32, #tpu.memory_space<vmem>>, vector<8x32xf32>
      tpu.vector_store %arg10[%c0_35, %c0_36], %67 {strides = array<i32>} : memref<8x32xf32, #tpu.memory_space<vmem>>, vector<8x32xf32>,
    } else {
    }
    return
  }
  func.func @transform_0(%arg0: i32, %arg1: i32, %arg2: i32) -> (i32, i32) {
    %c0_i32 = arith.constant 0 : i32
    %c0_i32_0 = arith.constant 0 : i32
    return %c0_i32, %arg0 : i32, i32
  }
  func.func @transform_1(%arg0: i32, %arg1: i32, %arg2: i32) -> (i32, i32) {
    %c0_i32 = arith.constant 0 : i32
    return %arg2, %arg0 : i32, i32
  }
  func.func @transform_2(%arg0: i32, %arg1: i32, %arg2: i32) -> (i32, i32) {
    %c0_i32 = arith.constant 0 : i32
    %c0_i32_0 = arith.constant 0 : i32
    return %c0_i32, %arg0 : i32, i32
  }
  func.func @transform_3(%arg0: i32, %arg1: i32, %arg2: i32) -> (i32, i32, i32) {
    %c0_i32 = arith.constant 0 : i32
    %c0_i32_0 = arith.constant 0 : i32
    return %arg2, %arg1, %c0_i32 : i32, i32, i32
  }
  func.func @transform_4(%arg0: i32, %arg1: i32, %arg2: i32) -> (i32, i32) {
    %c0_i32 = arith.constant 0 : i32
    %c0_i32_0 = arith.constant 0 : i32
    return %arg1, %c0_i32 : i32, i32
  }
  func.func @transform_5(%arg0: i32, %arg1: i32, %arg2: i32) -> (i32, i32) {
    %c0_i32 = arith.constant 0 : i32
    %c0_i32_0 = arith.constant 0 : i32
    return %arg1, %c0_i32 : i32, i32
  }
  func.func @transform_6(%arg0: i32, %arg1: i32, %arg2: i32) -> (i32, i32) {
    %c0_i32 = arith.constant 0 : i32
    %c0_i32_0 = arith.constant 0 : i32
    return %arg1, %c0_i32 : i32, i32
  }
  func.func @transform_7(%arg0: i32, %arg1: i32, %arg2: i32) -> (i32, i32) {
    %c0_i32 = arith.constant 0 : i32
    return %arg0, %arg1 : i32, i32
  }
}

</mosaic_0001>

<bundles_post_ra>
// kernel: tpu_custom_call.1
= control target key start
LH: loop header
LB: loop body
LE: loop exit
PB: predicated region body
PF: predicated region fallthrough
CT: control target
= control target key end

     0   :  { %12 = vsyncpa [#allocation4], 0  ;;  %s2815_s0 = inlined_call_operand.vmem [shape: f32[32,8], index: 0, kind: input, shape index: {}]   ;;  %s2816_s1 = inlined_call_operand.vmem [shape: f32[32,8], index: 1, kind: input, shape index: {}]   ;;  %s2817_s2 = inlined_call_operand.vmem [shape: f32[32,8], index: 2, kind: input, shape index: {}]   ;;  %s2818_s3 = inlined_call_operand.hbm [shape: f32[32,32,32], index: 3, kind: input, shape index: {}]   ;;  %s2819_s4 = inlined_call_operand.vmem [shape: f32[32,32], index: 4, kind: input, shape index: {}]   ;;  %s2820_s5 = inlined_call_operand.vmem [shape: f32[32,32], index: 5, kind: input, shape index: {}]   ;;  %s2821_s6 = inlined_call_operand.vmem [shape: f32[32,1], index: 6, kind: input, shape index: {}]   ;;  %s2822_s7 = inlined_call_operand.hbm [shape: f32[8,32], index: 7, kind: output, shape index: {}]  }
   0x1   :  { %14 = vsyncpa [#allocation4 + $0x1], 0 }
   0x2   :  { %15 = vsyncpa [#allocation5], 0  ;;  %s2445_s24 = smov 0   ;;  %s2447_s25 = smov 0  }
   0x3   :  { %s2449_s26 = smov 0   ;;  %s2451_s27 = smov 0  }
   0x4   :  { %s2453_s28 = smov 0   ;;  %s2455_s29 = smov 0  }
   0x5 LB: > { %s1825_s30 = sadd.s32 4294967295, %s2398_s29   ;;  %s33_s8 = sadd.s32 1, %s2394_s28  ;;  %s2398_s29 = sphi %s2455_s29, %s21_s29   ;;  %s2394_s28 = sphi %s2453_s28, %s2831_s28   ;;  %s2390_s27 = sphi %s2451_s27, %s2830_s27   ;;  %s2386_s26 = sphi %s2449_s26, %s2829_s26   ;;  %s2382_s25 = sphi %s2447_s25, %s2828_s25   ;;  %s2378_s24 = sphi %s2445_s24, %s2827_s24  }
   0x6   : > { %p34_p0 = scmp.ge.s32.totalorder %s33_s8, 4  ;;  %s129_s9 = sadd.s32 1, %s2386_s26 }
   0x7   : > { %p136_p1 = scmp.ne.s32.totalorder %s2386_s26, %s2382_s25  ;;  %p137_p2 = scmp.eq.s32.totalorder %s2398_s29, 0 }
   0x8   : > { %s2833_s8 = smov (%p34_p0, %s33_s8), 0  ;;  %p142_p4 = scmp.ne.s32.totalorder %s2382_s25, %s2378_s24 }
   0x9   : > { %p2481_p3 = por %p137_p2, %p136_p1  ;;  %s124_s11 = ssub.s32 %s2394_s28, %s2833_s8 }
   0xa   : > { %p143_p5 = scmp.eq.s32.totalorder %s1825_s30, 0  ;;  %p127_p6 = scmp.eq.s32.totalorder %s124_s11, 0 }
   0xb   : > { %p2230_p8 = scmp.lt.s32.totalorder %s2398_s29, 4  ;;  %s323_s14 = sand.u32 1, %s2386_s26  }
   0xc   : > { %p2490_p7 = por %p143_p5, %p142_p4  ;;  %s1915_s15 = sshll.u32 %s2394_s28, 12 }
   0xd   : > { %s2496_s13 = scalar_select %p127_p6, %s2386_s26, %s129_s9  }
   0xe   : > { %s1833_s16 = sshll.u32 %s323_s14, 8  ;;  %s2503_s19 = scalar_lea.hbm %s2818_s3, %s1915_s15 }
   0xf   : > { %s327_s20 = scalar_lea.vmem [#allocation3], %s1833_s16  ;;  %p2507_p9 = pnand %p2230_p8, %p2481_p3 }
  0x10   : > { %s337_s21 = sshll.u32 %s327_s20, 4  ;;  %s2513_s23 = scalar_lea.sflag [#allocation4], %s323_s14  ;;  %s2511_s21 = int_to_ptr.vmem [resolvable:$true] %s337_s21 }
  0x11   : > { %s2288_s24 = scalar_lea.hbm %s2503_s19, 4096  ;;  %p2290_p11 = pneg %p2507_p9 }
  0x12   : > { %p2289_p10 = scmp.ne.s32.totalorder %s2503_s19, %s2288_s24  ;;  %s2293_s11 = scalar_lea.hbm %s2818_s3, 16384 }
  0x13   : > { %p2294_p0 = scmp.lt.u32.totalorder %s2503_s19, %s2818_s3  ;;  %p2295_p1 = scmp.lt.u32.totalorder %s2293_s11, %s2288_s24 }
  0x14   : > { %p2291_p12 = pnand %p2290_p11, %p2289_p10  ;;  %p2297_p3 = scmp.lt.u32.totalorder %s2288_s24, %s2503_s19 }
  0x15   : > { %p2296_p2 = por %p2295_p1, %p2294_p0 }
  0x16   : > { %p2292_p13 = pneg %p2291_p12 }
  0x17   : > { %p2298_p4 = por %p2297_p3, %p2296_p2 }
  0x19   : > { %p2299_p5 = pnand %p2298_p4, %p2292_p13 }
  0x1b   : > { %2302 = shalt.err (!%p2299_p5)
}
  0x1c   : > { %s2303_s14 = scalar_lea.vmem %s2511_s21, 4096  ;;  %s2400_s17 = smov [#allocation3]  }
  0x1d   : > { %p2304_p6 = scmp.ne.s32.totalorder %s2511_s21, %s2303_s14  ;;  %s2308_s18 = sshll.u32 %s2400_s17, 4  ;;  %s2309_s18 = int_to_ptr.vmem [resolvable:$false] %s2308_s18 }
  0x1e   : > { %s2310_s20 = scalar_lea.vmem %s2309_s18, 8192  ;;  %p2311_p12 = scmp.lt.s32.totalorder %s2511_s21, %s2309_s18 }
  0x1f   : > { %p2306_p8 = pnand %p2304_p6, %p2290_p11  ;;  %p2312_p0 = scmp.lt.s32.totalorder %s2310_s20, %s2303_s14 }
  0x21   : > { %p2307_p10 = pneg %p2306_p8  ;;  %p2313_p1 = por %p2312_p0, %p2311_p12 }
  0x23   : > { %p2314_p2 = pnand %p2313_p1, %p2307_p10 }
  0x25   : > { %2317 = shalt.err (!%p2314_p2)
}
  0x26   : > { %s2401_s24 = smov 128   ;;  %s2402_s9 = smov 8  }
  0x27   : > { %2229 = dma.hbm_to_vmem [thread:$0]  (!%p2507_p9), %s2503_s19, 4096, %s2511_s21, %s2513_s23, %s2401_s24, %s2401_s24, %s2402_s9  }
  0x28   : > { %p1837_p11 = scmp.ge.s32.totalorder %s2398_s29, 1  ;;  %p345_p13 = scmp.lt.s32.totalorder %s2398_s29, 5 }
  0x2a   : > { %p346_p3 = pnand %p1837_p11, %p345_p13 }
  0x2b   : > { %s351_s10 = sand.u32 (!%p346_p3), 1, %s2382_s25  }
  0x2c   : > { %349 = sbr.rel (%p346_p3) target bundleno = 704 (0x2c0), region = 48  ;;  %s1838_s11 = sshll.u32 (!%p346_p3), %s351_s10, 8 }
  0x2d   : > { %s352_s15 = scalar_lea.sflag (!%p346_p3), [#allocation4], %s351_s10  ;;  %s2544_s16 = scalar_lea.vmem (!%p346_p3), [#allocation3], %s1838_s11 }
  0x33   : > { %2369 = dma.done.wait (%p2490_p7), %s352_s15, 4096  }
  0x34   : > { %2371 = vsyncadd (%p2490_p7), %s352_s15, 4294963200  ;;  %p415_p4 = scmp.lt.s32.totalorder %s2390_s27, 3  ;;  %v2560_v0 = vld [vmem:[%s2815_s0] sm:$0xff]  ;;  %v2565_v1 = vld [vmem:[%s2815_s0 + $0x8] sm:$0xff]  ;;  %p1840_p7 = scmp.ne.s32.totalorder %s2390_s27, 0 }
  0x35   : > { %v2570_v2 = vld [vmem:[%s2815_s0 + $0x10] sm:$0xff]  ;;  %v2575_v3 = vld [vmem:[%s2815_s0 + $0x18] sm:$0xff]  ;;  %v2144_v4 = vpack.c.bf16 (!%p1840_p7), %v2565_v1, %v2560_v0  ;;  %v462_v5 = vld [vmem:[%s2817_s2] sm:$0xff] (!%p1840_p7)  ;;  %vm466_vm0 = vcmask (!%p1840_p7), 261120   ;;  %v2403_v12 = vmov (!%p1840_p7), 0   ;;  %vm689_vm1 = vcmask (!%p1840_p7), 64512  }
  0x36   : > { %s416_s19 = scalar_select %p415_p4, %s2390_s27, 3 }
  0x37   : > { %453 = sbr.rel (%p1840_p7) target bundleno = 288 (0x120), region = 56  ;;  %v463_v6 = vld [vmem:[%s2817_s2 + $0x8] sm:$0xff] (!%p1840_p7)  ;;  %v2148_v7 = vpack.c.bf16 (!%p1840_p7), %v2575_v3, %v2570_v2  ;;  %v464_v8 = vld [vmem:[%s2817_s2 + $0x10] sm:$0xff] (!%p1840_p7)  ;;  %v465_v10 = vld [vmem:[%s2817_s2 + $0x18] sm:$0xff] (!%p1840_p7)  ;;  %2286 = vset.pattern.permute.xlu0 (!%p1840_p7), %v2403_v12  ;;  %2287 = vset.pattern.permute.xlu1 (!%p1840_p7), %v2403_v12 }
  0x38   : > { %s1839_s21 = sshll.u32 %s416_s19, 3  ;;  %v2136_v9 = vpack.c.bf16 (!%p1840_p7), %v463_v6, %v462_v5  ;;  %v454_v11 = vld [vmem:[%s2819_s4] sm:$0xff] (!%p1840_p7)  ;;  %2145 = vmatprep.subr.bf16.mxu0 (!%p1840_p7), %v2144_v4  ;;  %v2140_v13 = vpack.c.bf16 (!%p1840_p7), %v465_v10, %v464_v8  ;;  %v663_v16 = vld [vmem:[%s2821_s6 + $0x10] sm:$0xff] (!%p1840_p7)  ;;  %v455_v17 = vld [vmem:[%s2819_s4 + $0x8] sm:$0xff] (!%p1840_p7) }
  0x39   : > { %s2555_s14 = scalar_lea.vmem %s2816_s1, %s1839_s21  ;;  %2018 = vmatprep.mubr.msk.f32.mxu0 (!%p1840_p7), %vm466_vm0, %v454_v11  ;;  %v458_v14 = vld [vmem:[%s2820_s5] sm:$0xff] (!%p1840_p7)  ;;  %2147 = vmatpush3.bf16.msra.mxu0 (!%p1840_p7), %v2144_v4  ;;  %v662_v18 = vld [vmem:[%s2821_s6 + $0x8] sm:$0xff] (!%p1840_p7)  ;;  %v456_v20 = vld [vmem:[%s2819_s4 + $0x10] sm:$0xff] (!%p1840_p7) }
  0x3a   : > { %2137 = vmatprep.subr.bf16.mxu1 (!%p1840_p7), %v2136_v9  ;;  %2149 = vmatprep.subr.bf16.mxu0 (!%p1840_p7), %v2148_v7  ;;  %v661_v15 = vld [vmem:[%s2821_s6] sm:$0xff] (!%p1840_p7)  ;;  %v459_v19 = vld [vmem:[%s2820_s5 + $0x8] sm:$0xff] (!%p1840_p7)  ;;  %v460_v21 = vld [vmem:[%s2820_s5 + $0x10] sm:$0xff] (!%p1840_p7) }
  0x3b   : > { %2139 = vmatpush3.bf16.msra.mxu1 (!%p1840_p7), %v2136_v9  ;;  %2004 = vmatprep.mubr.msk.f32.mxu1 (!%p1840_p7), %vm466_vm0, %v458_v14  ;;  %v664_v22 = vld [vmem:[%s2821_s6 + $0x18] sm:$0xff] (!%p1840_p7) }
  0x3c   : > { %2141 = vmatprep.subr.bf16.mxu1 (!%p1840_p7), %v2140_v13  ;;  %667 = vperm.xlu0 (!%p1840_p7), %2286, %v661_v15   ;;  %v457_v23 = vld [vmem:[%s2819_s4 + $0x18] sm:$0xff] (!%p1840_p7) }
  0x3d   : > { %677 = vperm.xlu1 (!%p1840_p7), %2287, %v663_v16   ;;  %2151 = vmatpush3.bf16.msra.mxu0 (!%p1840_p7), %v2148_v7  ;;  %v461_v24 = vld [vmem:[%s2820_s5 + $0x18] sm:$0xff] (!%p1840_p7) }
  0x3f   : > { %2143 = vmatpush3.bf16.msra.mxu1 %v2140_v13 }
  0x40   : > { %2019 = vmatmul.mubr.msk.f32.vlgmr.msra.gmra.mrb[0].mxu0 %vm466_vm0, %v455_v17  ;;  %672 = vperm.xlu0 %2286, %v662_v18  }
  0x41   : > { %2021 = vmatprep.mubr.msk.f32.mxu0 %vm466_vm0, %v456_v20  ;;  %682 = vperm.xlu1 %2287, %v664_v22  }
  0x42   : > { %2005 = vmatmul.mubr.msk.f32.vlgmr.msra.gmra.mrb[0].mxu1 %vm466_vm0, %v459_v19 }
  0x43   : > { %2007 = vmatprep.mubr.msk.f32.mxu1 %vm466_vm0, %v460_v21 }
  0x44   : > { %2022 = vmatmul.mubr.msk.f32.gmra.mrb[2].mxu0 %vm466_vm0, %v457_v23 }
  0x46   : > { %2008 = vmatmul.mubr.msk.f32.gmra.mrb[2].mxu1 %vm466_vm0, %v461_v24 }
  0xbb   : > { %v668_v25 = vpop.permute.xlu0 %667 }
  0xbc   : > { %v678_v26 = vpop.permute.xlu1 %677 }
  0xbf   : > { %v673_v28 = vpop.permute.xlu0 %672 }
  0xc0   : > { %v683_v41 = vpop.permute.xlu1 %682 }
 0x113   : > { %v2020_v27 = vpop.f32.mrb[0].mxu0 }
 0x114   : > { %v642_v30 = vpop.f32.mrb[1].mxu0 }
 0x115   : > { %v2006_v29 = vpop.f32.mrb[0].mxu1 }
 0x116   : > { %v648_v31 = vadd.f32 %v2020_v27, %v2006_v29  ;;  %v545_v32 = vpop.f32.mrb[1].mxu1 }
 0x117   : > { %v643_v33 = vadd.f32 %v642_v30, %v545_v32  ;;  %v2023_v35 = vpop.f32.mrb[2].mxu0 }
 0x118   : > { %v686_v34 = vadd.f32 %v673_v28, %v648_v31  ;;  %v652_v38 = vpop.f32.mrb[3].mxu0 }
 0x119   : > { %v685_v36 = vadd.f32 %v668_v25, %v643_v33  ;;  %v2009_v37 = vpop.f32.mrb[2].mxu1 }
 0x11a   : > { %691 = vst.msk [vmem:[#allocation2 + $0x8] sm:$0xff] %vm689_vm1, %v686_v34  ;;  %v658_v39 = vadd.f32 %v2023_v35, %v2009_v37  ;;  %v555_v40 = vpop.f32.mrb[3].mxu1 }
 0x11b   : > { %690 = vst.msk [vmem:[#allocation2] sm:$0xff] %vm689_vm1, %v685_v36  ;;  %v653_v42 = vadd.f32 %v652_v38, %v555_v40 }
 0x11c   : > { %v688_v43 = vadd.f32 %v683_v41, %v658_v39 }
 0x11d   : > { %v687_v44 = vadd.f32 %v678_v26, %v653_v42 }
 0x11e   : > { %693 = vst.msk [vmem:[#allocation2 + $0x18] sm:$0xff] %vm689_vm1, %v688_v43 }
 0x11f   : > { %692 = vst.msk [vmem:[#allocation2 + $0x10] sm:$0xff] %vm689_vm1, %v687_v44 }
 0x120 PF: > { %v2640_v45 = vpack.c.bf16 %v2565_v1, %v2560_v0  ;;  %v2644_v46 = vpack.c.bf16 %v2575_v3, %v2570_v2  ;;  %v699_v47 = vld [vmem:[%s2544_s16] sm:$0xff]  ;;  %vm703_vm2 = vcmask 261120   ;;  %v700_v49 = vld [vmem:[%s2544_s16 + $0x8] sm:$0xff]  ;;  %v701_v51 = vld [vmem:[%s2544_s16 + $0x10] sm:$0xff]  ;;  %v801_v15 = vlaneseq  ;;  %p1909_p9 = scmp.ne.s32.totalorder %s2390_s27, 3 }
 0x121   : > { %v1853_v48 = vld [vmem:[%s2544_s16 + $0x20] sm:$0xff]  ;;  %2032 = vmatprep.mubr.msk.f32.mxu0 %vm703_vm2, %v699_v47  ;;  %v1854_v50 = vld [vmem:[%s2544_s16 + $0x28] sm:$0xff]  ;;  %v1855_v52 = vld [vmem:[%s2544_s16 + $0x30] sm:$0xff]  ;;  %vm1611_vm3 = vcmask 64512  }
 0x122   : > { %2046 = vmatprep.mubr.msk.f32.mxu1 %vm703_vm2, %v1853_v48  ;;  %2153 = vmatprep.subr.bf16.mxu0 %v2640_v45  ;;  %v702_v53 = vld [vmem:[%s2544_s16 + $0x18] sm:$0xff]  ;;  %v1861_v55 = vld [vmem:[%s2544_s16 + $0x40] sm:$0xff]  ;;  %v1862_v57 = vld [vmem:[%s2544_s16 + $0x48] sm:$0xff]  ;;  %v2742_v16 = vshrl.u32 %v801_v15, 7 }
 0x123   : > { %2161 = vmatprep.subr.bf16.mxu1 %v2640_v45  ;;  %2155 = vmatpush3.bf16.msra.mxu0 %v2640_v45  ;;  %v1856_v54 = vld [vmem:[%s2544_s16 + $0x38] sm:$0xff]  ;;  %v1869_v56 = vld [vmem:[%s2544_s16 + $0x60] sm:$0xff]  ;;  %v1870_v58 = vld [vmem:[%s2544_s16 + $0x68] sm:$0xff] }
 0x124   : > { %2163 = vmatpush3.bf16.msra.mxu1 %v2640_v45  ;;  %2157 = vmatprep.subr.bf16.mxu0 %v2644_v46  ;;  %v1863_v59 = vld [vmem:[%s2544_s16 + $0x50] sm:$0xff]  ;;  %v1864_v61 = vld [vmem:[%s2544_s16 + $0x58] sm:$0xff]  ;;  %v1877_v63 = vld [vmem:[%s2544_s16 + $0x80] sm:$0xff]  ;;  %v803_v17 = vsub.s32 0, %v2742_v16  ;;  %v917_v18 = vsub.s32 1, %v2742_v16  ;;  %v1031_v30 = vsub.s32 2, %v2742_v16 }
 0x125   : > { %2165 = vmatprep.subr.bf16.mxu1 %v2644_v46  ;;  %v1871_v60 = vld [vmem:[%s2544_s16 + $0x70] sm:$0xff]  ;;  %v1872_v62 = vld [vmem:[%s2544_s16 + $0x78] sm:$0xff]  ;;  %v1885_v0 = vld [vmem:[%s2544_s16 + $0xa0] sm:$0xff]  ;;  %v1145_v33 = vsub.s32 3, %v2742_v16 }
 0x126   : > { %v1878_v1 = vld [vmem:[%s2544_s16 + $0x88] sm:$0xff]  ;;  %v1879_v3 = vld [vmem:[%s2544_s16 + $0x90] sm:$0xff]  ;;  %v1880_v5 = vld [vmem:[%s2544_s16 + $0x98] sm:$0xff] }
 0x127   : > { %2159 = vmatpush3.bf16.msra.mxu0 %v2644_v46  ;;  %v1886_v2 = vld [vmem:[%s2544_s16 + $0xa8] sm:$0xff]  ;;  %v1887_v4 = vld [vmem:[%s2544_s16 + $0xb0] sm:$0xff]  ;;  %v1888_v6 = vld [vmem:[%s2544_s16 + $0xb8] sm:$0xff] }
 0x128   : > { %2167 = vmatpush3.bf16.msra.mxu1 %v2644_v46  ;;  %2169 = vmatprep.subr.bf16.mxu0 %v2640_v45  ;;  %v1893_v7 = vld [vmem:[%s2544_s16 + $0xc0] sm:$0xff]  ;;  %v1894_v9 = vld [vmem:[%s2544_s16 + $0xc8] sm:$0xff]  ;;  %v1895_v11 = vld [vmem:[%s2544_s16 + $0xd0] sm:$0xff] }
 0x129   : > { %2177 = vmatprep.subr.bf16.mxu1 %v2640_v45  ;;  %v1901_v8 = vld [vmem:[%s2544_s16 + $0xe0] sm:$0xff]  ;;  %v1902_v10 = vld [vmem:[%s2544_s16 + $0xe8] sm:$0xff]  ;;  %v1903_v12 = vld [vmem:[%s2544_s16 + $0xf0] sm:$0xff] }
 0x12a   : > { %2033 = vmatmul.mubr.msk.f32.vlgmr.msra.gmra.mrb[0].mxu0 %vm703_vm2, %v700_v49  ;;  %v1896_v13 = vld [vmem:[%s2544_s16 + $0xd8] sm:$0xff]  ;;  %v2747_v19 = vld [vmem:[%s2555_s14] sm:$0xff]  ;;  %v696_v22 = vld [vmem:[#allocation2 + $0x8] sm:$0xff] }
 0x12b   : > { %2047 = vmatmul.mubr.msk.f32.vlgmr.msra.gmra.mrb[0].mxu1 %vm703_vm2, %v1854_v50  ;;  %2171 = vmatpush3.bf16.msra.mxu0 %v2640_v45  ;;  %v1904_v14 = vld [vmem:[%s2544_s16 + $0xf8] sm:$0xff]  ;;  %v804_v20 = vrot.slane %v2747_v19, %v803_v17  ;;  %v918_v21 = vrot.slane %v2747_v19, %v917_v18  ;;  %v695_v26 = vld [vmem:[#allocation2] sm:$0xff]  ;;  %v697_v41 = vld [vmem:[#allocation2 + $0x10] sm:$0xff]  ;;  %v1146_v49 = vrot.slane %v2747_v19, %v1145_v33 }
 0x12c   : > { %2035 = vmatprep.mubr.msk.f32.mxu0 %vm703_vm2, %v701_v51  ;;  %2179 = vmatpush3.bf16.msra.mxu1 %v2640_v45  ;;  %v698_v36 = vld [vmem:[#allocation2 + $0x18] sm:$0xff] }
 0x12d   : > { %2173 = vmatprep.subr.bf16.mxu0 %v2644_v46  ;;  %2049 = vmatprep.mubr.msk.f32.mxu1 %vm703_vm2, %v1855_v52 }
 0x12e   : > { %2181 = vmatprep.subr.bf16.mxu1 %v2644_v46  ;;  %2036 = vmatmul.mubr.msk.f32.gmra.mrb[2].mxu0 %vm703_vm2, %v702_v53 }
 0x12f   : > { %2050 = vmatmul.mubr.msk.f32.gmra.mrb[2].mxu1 %vm703_vm2, %v1856_v54  ;;  %2175 = vmatpush3.bf16.msra.mxu0 %v2644_v46 }
 0x130   : > { %2060 = vmatprep.mubr.msk.f32.mxu0 %vm703_vm2, %v1861_v55  ;;  %2183 = vmatpush3.bf16.msra.mxu1 %v2644_v46 }
 0x131   : > { %2185 = vmatprep.subr.bf16.mxu0 %v2640_v45  ;;  %2074 = vmatprep.mubr.msk.f32.mxu1 %vm703_vm2, %v1869_v56 }
 0x132   : > { %2193 = vmatprep.subr.bf16.mxu1 %v2640_v45  ;;  %2061 = vmatmul.mubr.msk.f32.vlgmr.msra.gmra.mrb[4].mxu0 %vm703_vm2, %v1862_v57  ;;  %v1259_v57 = vsub.s32 4, %v2742_v16 }
 0x133   : > { %2187 = vmatpush3.bf16.msra.mxu0 %v2640_v45  ;;  %2075 = vmatmul.mubr.msk.f32.vlgmr.msra.gmra.mrb[4].mxu1 %vm703_vm2, %v1870_v58 }
 0x134   : > { %2063 = vmatprep.mubr.msk.f32.mxu0 %vm703_vm2, %v1863_v59  ;;  %2195 = vmatpush3.bf16.msra.mxu1 %v2640_v45 }
 0x135   : > { %2189 = vmatprep.subr.bf16.mxu0 %v2644_v46  ;;  %2077 = vmatprep.mubr.msk.f32.mxu1 %vm703_vm2, %v1871_v60 }
 0x136   : > { %2064 = vmatmul.mubr.msk.f32.gmra.mrb[6].mxu0 %vm703_vm2, %v1864_v61  ;;  %2197 = vmatprep.subr.bf16.mxu1 %v2644_v46 }
 0x137   : > { %2191 = vmatpush3.bf16.msra.mxu0 %v2644_v46  ;;  %2078 = vmatmul.mubr.msk.f32.gmra.mrb[6].mxu1 %vm703_vm2, %v1872_v62  ;;  %v1373_v62 = vsub.s32 5, %v2742_v16 }
 0x138   : > { %2088 = vmatprep.mubr.msk.f32.mxu0 %vm703_vm2, %v1877_v63  ;;  %2199 = vmatpush3.bf16.msra.mxu1 %v2644_v46 }
 0x139   : > { %2201 = vmatprep.subr.bf16.mxu0 %v2640_v45  ;;  %2102 = vmatprep.mubr.msk.f32.mxu1 %vm703_vm2, %v1885_v0 }
 0x13a   : > { %2089 = vmatmul.mubr.msk.f32.vlgmr.msra.gmra.mrb[8].mxu0 %vm703_vm2, %v1878_v1  ;;  %2209 = vmatprep.subr.bf16.mxu1 %v2640_v45 }
 0x13b   : > { %2203 = vmatpush3.bf16.msra.mxu0 %v2640_v45  ;;  %2103 = vmatmul.mubr.msk.f32.vlgmr.msra.gmra.mrb[8].mxu1 %vm703_vm2, %v1886_v2 }
 0x13c   : > { %2091 = vmatprep.mubr.msk.f32.mxu0 %vm703_vm2, %v1879_v3  ;;  %2211 = vmatpush3.bf16.msra.mxu1 %v2640_v45  ;;  %v1032_v45 = vrot.slane %v2747_v19, %v1031_v30 }
 0x13d   : > { %2205 = vmatprep.subr.bf16.mxu0 %v2644_v46  ;;  %2105 = vmatprep.mubr.msk.f32.mxu1 %vm703_vm2, %v1887_v4 }
 0x13e   : > { %2092 = vmatmul.mubr.msk.f32.gmra.mrb[10].mxu0 %vm703_vm2, %v1880_v5  ;;  %2213 = vmatprep.subr.bf16.mxu1 %v2644_v46 }
 0x13f   : > { %2207 = vmatpush3.bf16.msra.mxu0 %v2644_v46  ;;  %2106 = vmatmul.mubr.msk.f32.gmra.mrb[10].mxu1 %vm703_vm2, %v1888_v6 }
 0x140   : > { %2116 = vmatprep.mubr.msk.f32.mxu0 %vm703_vm2, %v1893_v7  ;;  %2215 = vmatpush3.bf16.msra.mxu1 %v2644_v46  ;;  %v1260_v7 = vrot.slane %v2747_v19, %v1259_v57 }
 0x141   : > { %2130 = vmatprep.mubr.msk.f32.mxu1 %vm703_vm2, %v1901_v8 }
 0x142   : > { %2117 = vmatmul.mubr.msk.f32.vlgmr.msra.gmra.mrb[12].mxu0 %vm703_vm2, %v1894_v9 }
 0x143   : > { %2131 = vmatmul.mubr.msk.f32.vlgmr.msra.gmra.mrb[12].mxu1 %vm703_vm2, %v1902_v10  ;;  %2119 = vmatprep.mubr.msk.f32.mxu0 %vm703_vm2, %v1895_v11 }
 0x144   : > { %2133 = vmatprep.mubr.msk.f32.mxu1 %vm703_vm2, %v1903_v12  ;;  %v1374_v12 = vrot.slane %v2747_v19, %v1373_v62 }
 0x146   : > { %2120 = vmatmul.mubr.msk.f32.gmra.mrb[14].mxu0 %vm703_vm2, %v1896_v13 }
 0x147   : > { %2134 = vmatmul.mubr.msk.f32.gmra.mrb[14].mxu1 %vm703_vm2, %v1904_v14 }
 0x1fd   : > { %v2034_v23 = vpop.f32.mrb[0].mxu0 }
 0x1fe   : > { %v2048_v24 = vpop.f32.mrb[0].mxu1  ;;  %v806_v25 = vmul.f32 %v2034_v23, %v804_v20  ;;  %v782_v27 = vpop.f32.mrb[1].mxu0  ;;  %v1487_v23 = vsub.s32 6, %v2742_v16 }
 0x1ff   : > { %v920_v28 = vmul.f32 %v2048_v24, %v918_v21  ;;  %v896_v29 = vpop.f32.mrb[1].mxu1  ;;  %v805_v31 = vmul.f32 %v804_v20, %v782_v27 }
 0x200   : > { %v919_v32 = vmul.f32 %v918_v21, %v896_v29  ;;  %v810_v34 = vadd.f32 %v806_v25, %v696_v22 }
 0x201   : > { %v809_v35 = vadd.f32 %v805_v31, %v695_v26  ;;  %v2037_v37 = vpop.f32.mrb[2].mxu0 }
 0x202   : > { %v2051_v38 = vpop.f32.mrb[2].mxu1  ;;  %v924_v39 = vadd.f32 %v920_v28, %v810_v34  ;;  %v808_v40 = vmul.f32 %v2037_v37, %v804_v20  ;;  %v792_v42 = vpop.f32.mrb[3].mxu0  ;;  %v1601_v28 = vsub.s32 7, %v2742_v16  ;;  %v1488_v37 = vrot.slane %v2747_v19, %v1487_v23 }
 0x203   : > { %v922_v43 = vmul.f32 %v2051_v38, %v918_v21  ;;  %v906_v44 = vpop.f32.mrb[3].mxu1  ;;  %v923_v46 = vadd.f32 %v919_v32, %v809_v35  ;;  %v807_v47 = vmul.f32 %v804_v20, %v792_v42 }
 0x204   : > { %v921_v48 = vmul.f32 %v918_v21, %v906_v44  ;;  %v812_v50 = vadd.f32 %v808_v40, %v698_v36  ;;  %v1602_v42 = vrot.slane %v2747_v19, %v1601_v28 }
 0x205   : > { %v811_v51 = vadd.f32 %v807_v47, %v697_v41  ;;  %v2062_v52 = vpop.f32.mrb[4].mxu0 }
 0x206   : > { %v926_v53 = vadd.f32 %v922_v43, %v812_v50  ;;  %v1034_v54 = vmul.f32 %v2062_v52, %v1032_v45  ;;  %v1010_v55 = vpop.f32.mrb[5].mxu0  ;;  %v2076_v56 = vpop.f32.mrb[4].mxu1 }
 0x207   : > { %v925_v58 = vadd.f32 %v921_v48, %v811_v51  ;;  %v1033_v59 = vmul.f32 %v1032_v45, %v1010_v55  ;;  %v1148_v60 = vmul.f32 %v2076_v56, %v1146_v49  ;;  %v1124_v61 = vpop.f32.mrb[5].mxu1 }
 0x208   : > { %v1038_v63 = vadd.f32 %v1034_v54, %v924_v39  ;;  %v1147_v0 = vmul.f32 %v1146_v49, %v1124_v61 }
 0x209   : > { %v1037_v1 = vadd.f32 %v1033_v59, %v923_v46  ;;  %v2065_v2 = vpop.f32.mrb[6].mxu0 }
 0x20a   : > { %v1152_v3 = vadd.f32 %v1148_v60, %v1038_v63  ;;  %v1036_v4 = vmul.f32 %v2065_v2, %v1032_v45  ;;  %v1020_v5 = vpop.f32.mrb[7].mxu0  ;;  %v2079_v6 = vpop.f32.mrb[6].mxu1 }
 0x20b   : > { %v1151_v8 = vadd.f32 %v1147_v0, %v1037_v1  ;;  %v1035_v9 = vmul.f32 %v1032_v45, %v1020_v5  ;;  %v1150_v10 = vmul.f32 %v2079_v6, %v1146_v49  ;;  %v1134_v11 = vpop.f32.mrb[7].mxu1 }
 0x20c   : > { %v1040_v13 = vadd.f32 %v1036_v4, %v926_v53  ;;  %v1149_v14 = vmul.f32 %v1146_v49, %v1134_v11 }
 0x20d   : > { %v1039_v15 = vadd.f32 %v1035_v9, %v925_v58  ;;  %v2090_v17 = vpop.f32.mrb[8].mxu0 }
 0x20e   : > { %v1154_v18 = vadd.f32 %v1150_v10, %v1040_v13  ;;  %v1262_v20 = vmul.f32 %v2090_v17, %v1260_v7  ;;  %v1238_v21 = vpop.f32.mrb[9].mxu0  ;;  %v2104_v22 = vpop.f32.mrb[8].mxu1 }
 0x20f   : > { %v1153_v24 = vadd.f32 %v1149_v14, %v1039_v15  ;;  %v1261_v25 = vmul.f32 %v1260_v7, %v1238_v21  ;;  %v1376_v26 = vmul.f32 %v2104_v22, %v1374_v12  ;;  %v1352_v27 = vpop.f32.mrb[9].mxu1 }
 0x210   : > { %v1266_v29 = vadd.f32 %v1262_v20, %v1152_v3  ;;  %v1375_v30 = vmul.f32 %v1374_v12, %v1352_v27 }
 0x211   : > { %v1265_v31 = vadd.f32 %v1261_v25, %v1151_v8  ;;  %v2093_v32 = vpop.f32.mrb[10].mxu0 }
 0x212   : > { %v1380_v33 = vadd.f32 %v1376_v26, %v1266_v29  ;;  %v1264_v34 = vmul.f32 %v2093_v32, %v1260_v7  ;;  %v1248_v35 = vpop.f32.mrb[11].mxu0  ;;  %v2107_v36 = vpop.f32.mrb[10].mxu1 }
 0x213   : > { %v1379_v38 = vadd.f32 %v1375_v30, %v1265_v31  ;;  %v1263_v39 = vmul.f32 %v1260_v7, %v1248_v35  ;;  %v1378_v40 = vmul.f32 %v2107_v36, %v1374_v12  ;;  %v1362_v41 = vpop.f32.mrb[11].mxu1 }
 0x214   : > { %v1268_v43 = vadd.f32 %v1264_v34, %v1154_v18  ;;  %v1377_v44 = vmul.f32 %v1374_v12, %v1362_v41 }
 0x215   : > { %v1267_v45 = vadd.f32 %v1263_v39, %v1153_v24  ;;  %v2118_v16 = vpop.f32.mrb[12].mxu0 }
 0x216   : > { %v1382_v46 = vadd.f32 %v1378_v40, %v1268_v43  ;;  %v1490_v47 = vmul.f32 %v2118_v16, %v1488_v37  ;;  %v1466_v48 = vpop.f32.mrb[13].mxu0  ;;  %v2132_v49 = vpop.f32.mrb[12].mxu1 }
 0x217   : > { %v1381_v50 = vadd.f32 %v1377_v44, %v1267_v45  ;;  %v1489_v51 = vmul.f32 %v1488_v37, %v1466_v48  ;;  %v1604_v52 = vmul.f32 %v2132_v49, %v1602_v42  ;;  %v1580_v53 = vpop.f32.mrb[13].mxu1 }
 0x218   : > { %v1494_v54 = vadd.f32 %v1490_v47, %v1380_v33  ;;  %v1603_v55 = vmul.f32 %v1602_v42, %v1580_v53 }
 0x219   : > { %v1493_v56 = vadd.f32 %v1489_v51, %v1379_v38  ;;  %v2121_v57 = vpop.f32.mrb[14].mxu0 }
 0x21a   : > { %v1608_v58 = vadd.f32 %v1604_v52, %v1494_v54  ;;  %v1492_v59 = vmul.f32 %v2121_v57, %v1488_v37  ;;  %v1476_v19 = vpop.f32.mrb[15].mxu0  ;;  %v2135_v60 = vpop.f32.mrb[14].mxu1 }
 0x21b   : > { %v1607_v61 = vadd.f32 %v1603_v55, %v1493_v56  ;;  %v1491_v62 = vmul.f32 %v1488_v37, %v1476_v19  ;;  %v1606_v63 = vmul.f32 %v2135_v60, %v1602_v42  ;;  %v1590_v0 = vpop.f32.mrb[15].mxu1  ;;  %1619 = sbr.rel (%p1909_p9) target bundleno = 679 (0x2a7), region = 60 }
 0x21c   : > { %1613 = vst.msk [vmem:[#allocation2 + $0x8] sm:$0xff] %vm1611_vm3, %v1608_v58  ;;  %v1496_v1 = vadd.f32 %v1492_v59, %v1382_v46  ;;  %v1605_v2 = vmul.f32 %v1602_v42, %v1590_v0 }
 0x21d   : > { %1612 = vst.msk [vmem:[#allocation2] sm:$0xff] %vm1611_vm3, %v1607_v61  ;;  %v1495_v3 = vadd.f32 %v1491_v62, %v1381_v50 }
 0x21e   : > { %v1610_v4 = vadd.f32 %v1606_v63, %v1496_v1 }
 0x21f   : > { %v1609_v5 = vadd.f32 %v1605_v2, %v1495_v3 }
 0x220   : > { %1615 = vst.msk [vmem:[#allocation2 + $0x18] sm:$0xff] %vm1611_vm3, %v1610_v4 }
 0x221   : > { %1614 = vst.msk [vmem:[#allocation2 + $0x10] sm:$0xff] %vm1611_vm3, %v1609_v5 }
 0x223   : > { %v1621_v7 = vld [vmem:[#allocation2 + $0x8] sm:$0xff] }
 0x224   : > { %v1620_v6 = vld [vmem:[#allocation2] sm:$0xff] }
 0x225   : > { %1624 = vxpose.xlu0.b32.start [1/4] (short) (narrow) %v1620_v6, 8 }
 0x227   : > { %v1623_v9 = vld [vmem:[#allocation2 + $0x18] sm:$0xff] }
 0x228   : > { %v1622_v8 = vld [vmem:[#allocation2 + $0x10] sm:$0xff] }
 0x229   : > { %1625 = vxpose.xlu0.b32.cont [2/4] (short) (narrow) %v1621_v7, 8 }
 0x22d   : > { %1626 = vxpose.xlu0.b32.cont [3/4] (short) (narrow) %v1622_v8, 8 }
 0x231   : > { %1627 = vxpose.xlu0.b32.end [4/4] (short) (narrow) %v1623_v9, 8 }
 0x2a5   : > { %v1640_v10 = vpop.trf.xlu0 }
 0x2a6   : > { %1656 = vst.msk [vmem:[#allocation6] sm:$0xff] %vm703_vm2, %v1640_v10 }
 0x2a7 PF: > { %p2771_p5 = scmp.eq.s32.totalorder %s1825_s30, 3  ;;  %s2404_s27 = smov [#allocation6]  }
 0x2a8   : > { %s1667_s14 = sshll.u32 %s2404_s27, 4  ;;  %s1668_s14 = int_to_ptr.vmem [resolvable:$true] %s1667_s14 }
 0x2a9   : > { %s2318_s18 = scalar_lea.vmem %s1668_s14, 128  ;;  %p2325_p12 = scmp.lt.s32.totalorder %s1668_s14, %s1668_s14 }
 0x2aa   : > { %p2319_p6 = scmp.ne.s32.totalorder %s1668_s14, %s2318_s18  ;;  %p2326_p0 = scmp.lt.s32.totalorder %s2318_s18, %s2318_s18 }
 0x2ac   : > { %p2320_p8 = pnand %p2319_p6, %p2771_p5  ;;  %p2327_p1 = por %p2326_p0, %p2325_p12 }
 0x2ae   : > { %p2321_p10 = pneg %p2320_p8 }
 0x2b0   : > { %p2328_p2 = pnand %p2327_p1, %p2321_p10 }
 0x2b2   : > { %2331 = shalt.err (!%p2328_p2)
}
 0x2b3   : > { %s2332_s30 = scalar_lea.hbm %s2822_s7, 128 }
 0x2b4   : > { %p2333_p11 = scmp.ne.s32.totalorder %s2822_s7, %s2332_s30  ;;  %p2338_p4 = scmp.lt.u32.totalorder %s2332_s30, %s2822_s7 }
 0x2b6   : > { %p2334_p13 = pnand %p2333_p11, %p2771_p5 }
 0x2b8   : > { %p2335_p3 = pneg %p2334_p13 }
 0x2ba   : > { %p2340_p7 = pnand %p2338_p4, %p2335_p3 }
 0x2bc   : > { %2343 = shalt.err (!%p2340_p7)
}
 0x2bd   : > { %2223 = dma.vmem_to_hbm [thread:$0]  (%p2771_p5), %s1668_s14, 128, %s2822_s7, [#allocation5]  }
 0x2be   : > { %2373 = dma.done.wait (%p2771_p5), [#allocation5], 128  }
 0x2bf   : > { %2375 = vsyncadd (%p2771_p5), [#allocation5], 4294967168 }
 0x2c0 PF: > { %s21_s29 = sadd.s32 1, %s2398_s29   ;;  %s2827_s24 = smov %s2382_s25 }
 0x2c1   : > { %p18_p9 = scmp.ge.s32.totalorder %s21_s29, 6   ;;  %s2828_s25 = smov %s2386_s26 }
 0x2c2   : > { %s2829_s26 = smov %s2496_s13  ;;  %s2830_s27 = smov %s2394_s28 }
 0x2c3   : > { %s2831_s28 = smov %s2833_s8  ;;  %20 = sbr.rel (!%p18_p9) target bundleno = 5 (0x5), region = 119 }
 0x2ca   :  { %1680 = vsyncpa [#allocation4], 1 }
 0x2cb   :  { %1682 = vsyncpa [#allocation4 + $0x1], 1 }
 0x2cc   :  { %1683 = vsyncpa [#allocation5], 1 }
 0x2cd   :  { %1685 = vsyncpa [#allocation5 + $0x1], 1 }

</bundles_post_ra>
